<compile_context>
chip_gen: v7x
topology: tpu7x:2x2x1
jax: 0.10.0
libtpu: 0.0.40
codegen_flags: <defaults>
</compile_context>

<pallas_src>
import functools

import jax
import jax.numpy as jnp
import numpy as np
from jax.experimental import pallas as pl
from jax.experimental.pallas import tpu as pltpu


def _round_up(x, m):
    return (x + m - 1) // m * m


# ---------------------------------------------------------------------------
# Pallas kernel: tiled GEMM, f32 accumulator, fused bias (+ LeakyReLU(0.01))
# ---------------------------------------------------------------------------
def _gemm_kernel(a_ref, b_ref, bias_ref, o_ref, acc_ref, *, neg_slope, apply_act):
    k = pl.program_id(2)

    @pl.when(k == 0)
    def _():
        acc_ref[...] = jnp.zeros_like(acc_ref)

    acc_ref[...] += jnp.dot(a_ref[...], b_ref[...],
                            preferred_element_type=jnp.float32)

    @pl.when(k == pl.num_programs(2) - 1)
    def _():
        acc = acc_ref[...] + bias_ref[...]          # bias (1, tn) broadcasts
        if apply_act:
            acc = jnp.where(acc >= 0, acc, neg_slope * acc)
        o_ref[...] = acc.astype(o_ref.dtype)


def fused_gemm(a, b, bias, apply_act, out_dtype=jnp.float32, neg_slope=0.01):
    """a:(M,K) bf16, b:(K,N) bf16, bias:(N,) f32 -> (M,N) out_dtype.

    bf16 MXU inputs, f32 accumulation, bias + optional LeakyReLU fused into the
    epilogue.  Padded rows/cols (if any) receive bias+activation garbage and are
    always sliced off before returning.
    """
    a = a.astype(jnp.bfloat16)
    b = b.astype(jnp.bfloat16)
    M, K = a.shape
    K2, N = b.shape
    assert K == K2

    small_m = M <= 256          # deep, weight-dominated layers / heads

    # ----- lane (N) tile: lane-dense, unpadded where possible ---------------
    if N <= 128:
        tn = N                                   # full-extent lane block
    else:
        tn = min(512 if small_m else 128, N)
        # keep tn | N and >= 2 lane blocks when possible (v7x megacore)
        while tn > 128 and (N % tn != 0 or N // tn < 2):
            tn -= 128
        if N % tn != 0:
            tn = 128
    Np = _round_up(N, tn)

    # ----- reduction (K) tile: full-extent when it fits (no K pad) ----------
    tk_cap = 2048 if small_m else 512
    if K <= tk_cap:
        tk = K                                   # single k step, no padding
    else:
        tk = 128
        for cand in (2048, 1024, 512, 256, 128):
            if cand <= tk_cap and K % cand == 0:
                tk = cand
                break
    Kp = _round_up(K, tk)

    # ----- row (M) tile: multiple of 16 (bf16 sublane pack) -----------------
    tm_cap = 256 if small_m else 512
    tm = min(tm_cap, _round_up(M, 16))
    Mp = _round_up(M, tm)

    # Pad only when actually required (first layer K=48 / heads stay unpadded).
    if (Mp, Kp) != (M, K):
        a = jnp.pad(a, ((0, Mp - M), (0, Kp - K)))
    if (Kp, Np) != (K, N):
        b = jnp.pad(b, ((0, Kp - K), (0, Np - N)))
    bias_p = bias.astype(jnp.float32)
    if Np != N:
        bias_p = jnp.pad(bias_p, (0, Np - N))
    bias_p = bias_p.reshape(1, Np)

    grid = (Mp // tm, Np // tn, Kp // tk)

    # Honest VMEM budget from the actual tile footprint (double-buffered bf16
    # inputs, double-buffered output, f32 accumulator, bias) with headroom,
    # capped at 32 MiB so larger tiles stay safe on v7x (64 MiB physical / TC).
    out_itemsize = np.dtype(out_dtype).itemsize
    tile_bytes = (2 * tm * tk * 2 + 2 * tk * tn * 2
                  + 2 * tm * tn * out_itemsize + tm * tn * 4 + 2 * tn * 4)
    vmem_limit = int(min(max(int(tile_bytes * 1.5) + (2 << 20), 4 << 20),
                         32 << 20))

    cost = pl.CostEstimate(
        flops=2 * M * N * K,
        transcendentals=0,
        bytes_accessed=Mp * Kp * 2 + Kp * Np * 2 + Mp * Np * out_itemsize + Np * 4,
    )

    out = pl.pallas_call(
        functools.partial(_gemm_kernel, neg_slope=neg_slope, apply_act=apply_act),
        out_shape=jax.ShapeDtypeStruct((Mp, Np), out_dtype),
        grid_spec=pltpu.PrefetchScalarGridSpec(
            num_scalar_prefetch=0,
            grid=grid,
            in_specs=[
                pl.BlockSpec((tm, tk), lambda i, j, k: (i, k)),
                pl.BlockSpec((tk, tn), lambda i, j, k: (k, j)),
                pl.BlockSpec((1, tn), lambda i, j, k: (0, j)),
            ],
            out_specs=pl.BlockSpec((tm, tn), lambda i, j, k: (i, j)),
            scratch_shapes=[pltpu.VMEM((tm, tn), jnp.float32)],
        ),
        compiler_params=pltpu.CompilerParams(
            dimension_semantics=("parallel", "parallel", "arbitrary"),
            vmem_limit_bytes=vmem_limit,
        ),
        cost_estimate=cost,
    )(a, b, bias_p)
    if (Mp, Np) != (M, N):
        out = out[:M, :N]       # drop pad rows/cols (bias+act garbage lives there)
    return out


# ---------------------------------------------------------------------------
# NHWC im2col glue (plain JAX) — pure stack+reshape in the activation dtype
# (bf16 end-to-end), no full-tensor transpose, no extra cast copy.
# ---------------------------------------------------------------------------
def im2col_nhwc(x, kh, kw, stride, pad):
    """x: (N, H, W, C) -> patches (N*Ho*Wo, kh*kw*C), Ho, Wo."""
    n, h, w, c = x.shape
    xp = jnp.pad(x, ((0, 0), (pad, pad), (pad, pad), (0, 0))) if pad else x
    ho = (h + 2 * pad - kh) // stride + 1
    wo = (w + 2 * pad - kw) // stride + 1
    cols = []
    for di in range(kh):
        for dj in range(kw):
            cols.append(xp[:, di:di + stride * ho:stride,
                           dj:dj + stride * wo:stride, :])
    col = jnp.stack(cols, axis=3)                    # (N, Ho, Wo, kh*kw, C)
    patches = col.reshape(n * ho * wo, kh * kw * c)  # contiguous reshape
    return patches, ho, wo


def _weight_to_mat(weight):
    """PyTorch (Cout, Cin, kh, kw) -> bf16 (kh*kw*Cin, Cout), matching im2col."""
    cout, cin, kh, kw = weight.shape
    return jnp.transpose(weight, (2, 3, 1, 0)).reshape(kh * kw * cin, cout) \
              .astype(jnp.bfloat16)


def conv2d_nhwc(x, weight, bias, stride, pad, apply_act):
    """PyTorch-semantics Conv2d on an NHWC (bf16) activation."""
    n = x.shape[0]
    cout, cin, kh, kw = weight.shape
    patches, ho, wo = im2col_nhwc(x, kh, kw, stride, pad)
    wmat = _weight_to_mat(weight)
    if bias is None:
        bias = jnp.zeros((cout,), jnp.float32)
    # Intermediate layers stay bf16 (halves HBM writeback + next-layer reads).
    out_dtype = jnp.bfloat16 if apply_act else jnp.float32
    out = fused_gemm(patches, wmat, bias, apply_act, out_dtype=out_dtype)
    return out.reshape(n, ho, wo, cout)              # stays NHWC


# ---------------------------------------------------------------------------
# Heads: two tiny, separate GEMMs with UNPADDED weights (full-extent lane
# blocks); the old 128-lane block-diagonal packing wasted ~50x HBM/MXU work.
# ---------------------------------------------------------------------------
def discriminator_heads(h_nhwc, conv1_w, conv2_w):
    n, hh, ww, c = h_nhwc.shape

    # head 1 (out_src): 3x3, stride 1, pad 1, Cout=1, no bias
    p1, ho1, wo1 = im2col_nhwc(h_nhwc, 3, 3, 1, 1)
    w1 = _weight_to_mat(conv1_w)                     # (9*c, 1)
    src = fused_gemm(p1, w1, jnp.zeros((1,), jnp.float32),
                     apply_act=False, out_dtype=jnp.float32)
    out_src = jnp.transpose(src.reshape(n, ho1, wo1, 1), (0, 3, 1, 2))  # NCHW

    # head 2 (out_cls): kernel spans full spatial extent, no pad -> patches == h
    p2 = h_nhwc.reshape(n, hh * ww * c)
    w2 = _weight_to_mat(conv2_w)                     # (hh*ww*c, c_dim)
    c_dim = w2.shape[1]
    out_cls = fused_gemm(p2, w2, jnp.zeros((c_dim,), jnp.float32),
                         apply_act=False, out_dtype=jnp.float32)
    return out_src, out_cls


# ---------------------------------------------------------------------------
# Discriminator (PatchGAN) — parameter construction + forward
# ---------------------------------------------------------------------------
def init_discriminator_params(key, image_size, conv_dim, c_dim, repeat_num):
    params = {"main": []}
    scale = 0.05
    key, kw, kb = jax.random.split(key, 3)
    params["main"].append(
        (scale * jax.random.normal(kw, (conv_dim, 3, 4, 4), jnp.float32),
         scale * jax.random.normal(kb, (conv_dim,), jnp.float32)))
    curr_dim = conv_dim
    for _ in range(1, repeat_num):
        key, kw, kb = jax.random.split(key, 3)
        params["main"].append(
            (scale * jax.random.normal(kw, (curr_dim * 2, curr_dim, 4, 4), jnp.float32),
             scale * jax.random.normal(kb, (curr_dim * 2,), jnp.float32)))
        curr_dim *= 2
    ksize = image_size // (2 ** repeat_num)
    key, k1, k2 = jax.random.split(key, 3)
    params["conv1_w"] = scale * jax.random.normal(k1, (1, curr_dim, 3, 3), jnp.float32)
    params["conv2_w"] = scale * jax.random.normal(
        k2, (c_dim, curr_dim, ksize, ksize), jnp.float32)
    return params


def discriminator_forward(x_nchw, params):
    # Single NCHW->NHWC transpose and bf16 cast at the input boundary.
    h = jnp.transpose(x_nchw, (0, 2, 3, 1)).astype(jnp.bfloat16)
    for (w, b) in params["main"]:
        h = conv2d_nhwc(h, w, b, stride=2, pad=1, apply_act=True)
    return discriminator_heads(h, params["conv1_w"], params["conv2_w"])


# ---------------------------------------------------------------------------
# Pure-JAX reference (lax conv, f32) for correctness validation
# ---------------------------------------------------------------------------
def _conv_ref(x, w, b, stride, pad):
    out = jax.lax.conv_general_dilated(
        x, w, (stride, stride), [(pad, pad), (pad, pad)],
        dimension_numbers=("NCHW", "OIHW", "NCHW"))
    if b is not None:
        out = out + b[None, :, None, None]
    return out


def discriminator_ref(x, params):
    h = x
    for (w, b) in params["main"]:
        h = _conv_ref(h, w, b, 2, 1)
        h = jnp.where(h >= 0, h, 0.01 * h)
    out_src = _conv_ref(h, params["conv1_w"], None, 1, 1)
    out_cls = _conv_ref(h, params["conv2_w"], None, 1, 0)
    n, c = out_cls.shape[0], out_cls.shape[1]
    return out_src, out_cls.reshape(n, c)


if __name__ == "__main__":
    # Small shapes consistent with the module: image_size=16, conv_dim=8,
    # c_dim=5, repeat_num=3  ->  final NHWC feature map (2, 2, 2, 32).
    image_size, conv_dim, c_dim, repeat_num = 16, 8, 5, 3
    key = jax.random.PRNGKey(0)
    key, kp, kx = jax.random.split(key, 3)
    params = init_discriminator_params(kp, image_size, conv_dim, c_dim, repeat_num)
    x = jax.random.normal(kx, (2, 3, image_size, image_size), jnp.float32)

    @jax.jit
    def fwd(inp):
        return discriminator_forward(inp, params)

    out_src, out_cls = fwd(x)
    jax.block_until_ready((out_src, out_cls))

    ref_src, ref_cls = discriminator_ref(x, params)
    # Tolerance is loosened vs the f32 lax.conv reference because the MXU GEMMs
    # use bf16 inputs AND bf16 intermediate activations (deliberate precision
    # choice for a discriminator, not a bug).
    np.testing.assert_allclose(np.asarray(out_src), np.asarray(ref_src),
                               rtol=5e-2, atol=5e-2)
    np.testing.assert_allclose(np.asarray(out_cls), np.asarray(ref_cls),
                               rtol=5e-2, atol=5e-2)
    assert out_src.shape == (2, 1, image_size // 2 ** repeat_num,
                             image_size // 2 ** repeat_num)
    assert out_cls.shape == (2, c_dim)

    print("KERNEL_OK")
</pallas_src>

<mosaic_0001>
module attributes {stable_mosaic.version = 11 : i64} {
  func.func @_gemm_kernel(%arg0: i32, %arg1: i32, %arg2: i32, %arg3: memref<128x48xbf16, #tpu.memory_space<vmem>>, %arg4: memref<48x8xbf16, #tpu.memory_space<vmem>>, %arg5: memref<1x8xf32, #tpu.memory_space<vmem>>, %arg6: memref<128x8xbf16, #tpu.memory_space<vmem>>, %arg7: memref<128x8xf32, #tpu.memory_space<vmem>>) attributes {dimension_semantics = [#tpu.dimension_semantics<parallel>, #tpu.dimension_semantics<parallel>, #tpu.dimension_semantics<arbitrary>], iteration_bounds = array<i64: 1, 1, 1>, scalar_prefetch = 0 : i64, scratch_operands = 1 : i64, tpu.core_type = #tpu.core_type<tc>, window_params = [{transform_indices = @transform_0, window_bounds = array<i64: 128, 48>}, {transform_indices = @transform_1, window_bounds = array<i64: 48, 8>}, {transform_indices = @transform_2, window_bounds = array<i64: 1, 8>}, {transform_indices = @transform_3, window_bounds = array<i64: 128, 8>}]} {
    %c0_i32 = arith.constant 0 : i32
    %0 = arith.cmpi eq, %arg2, %c0_i32 : i32
    %1 = arith.extui %0 : i1 to i32
    %c0_i32_0 = arith.constant 0 : i32
    %2 = arith.cmpi ne, %1, %c0_i32_0 : i32
    scf.if %2 {
      %cst_10 = arith.constant 0.000000e+00 : f32
      %12 = vector.broadcast %cst_10 : f32 to vector<128x8xf32>
      %c0_11 = arith.constant 0 : index
      %c0_12 = arith.constant 0 : index
      %13 = vector.load %arg7[%c0_11, %c0_12] : memref<128x8xf32, #tpu.memory_space<vmem>>, vector<128x8xf32>
      tpu.vector_store %arg7[%c0_11, %c0_12], %12 {strides = array<i32>} : memref<128x8xf32, #tpu.memory_space<vmem>>, vector<128x8xf32>,
    } else {
    }
    %c0 = arith.constant 0 : index
    %c0_1 = arith.constant 0 : index
    %3 = vector.load %arg7[%c0, %c0_1] : memref<128x8xf32, #tpu.memory_space<vmem>>, vector<128x8xf32>
    %c0_2 = arith.constant 0 : index
    %c0_3 = arith.constant 0 : index
    %4 = vector.load %arg3[%c0_2, %c0_3] : memref<128x48xbf16, #tpu.memory_space<vmem>>, vector<128x48xbf16>
    %c0_4 = arith.constant 0 : index
    %c0_5 = arith.constant 0 : index
    %5 = vector.load %arg4[%c0_4, %c0_5] : memref<48x8xbf16, #tpu.memory_space<vmem>>, vector<48x8xbf16>
    %cst = arith.constant dense<0.000000e+00> : vector<128x8xf32>
    %6 = tpu.matmul %4, %5, %cst {dimension_numbers = #tpu.dot_dimension_numbers<[1], [0], [0], [1], [0, 0, 1, 1], [], []>} : vector<128x48xbf16>, vector<48x8xbf16>, vector<128x8xf32> -> vector<128x8xf32>
    %7 = arith.addf %3, %6 : vector<128x8xf32>
    %c0_6 = arith.constant 0 : index
    %c0_7 = arith.constant 0 : index
    %8 = vector.load %arg7[%c0_6, %c0_7] : memref<128x8xf32, #tpu.memory_space<vmem>>, vector<128x8xf32>
    tpu.vector_store %arg7[%c0_6, %c0_7], %7 {strides = array<i32>} : memref<128x8xf32, #tpu.memory_space<vmem>>, vector<128x8xf32>,
    %c0_i32_8 = arith.constant 0 : i32
    %9 = arith.cmpi eq, %arg2, %c0_i32_8 : i32
    %10 = arith.extui %9 : i1 to i32
    %c0_i32_9 = arith.constant 0 : i32
    %11 = arith.cmpi ne, %10, %c0_i32_9 : i32
    scf.if %11 {
      %c0_10 = arith.constant 0 : index
      %c0_11 = arith.constant 0 : index
      %12 = vector.load %arg7[%c0_10, %c0_11] : memref<128x8xf32, #tpu.memory_space<vmem>>, vector<128x8xf32>
      %c0_12 = arith.constant 0 : index
      %c0_13 = arith.constant 0 : index
      %13 = vector.load %arg5[%c0_12, %c0_13] : memref<1x8xf32, #tpu.memory_space<vmem>>, vector<1x8xf32>
      %14 = vector.broadcast %13 : vector<1x8xf32> to vector<128x8xf32>
      %15 = arith.addf %12, %14 : vector<128x8xf32>
      %cst_14 = arith.constant 0.000000e+00 : f32
      %16 = vector.broadcast %cst_14 : f32 to vector<128x8xf32>
      %17 = arith.cmpf oge, %15, %16 : vector<128x8xf32>
      %cst_15 = arith.constant 0.00999999977 : f32
      %18 = vector.broadcast %cst_15 : f32 to vector<128x8xf32>
      %19 = arith.mulf %18, %15 : vector<128x8xf32>
      %20 = arith.select %17, %15, %19 : vector<128x8xi1>, vector<128x8xf32>
      %21 = arith.truncf %20 : vector<128x8xf32> to vector<128x8xbf16>
      %c0_16 = arith.constant 0 : index
      %c0_17 = arith.constant 0 : index
      %22 = vector.load %arg6[%c0_16, %c0_17] : memref<128x8xbf16, #tpu.memory_space<vmem>>, vector<128x8xbf16>
      tpu.vector_store %arg6[%c0_16, %c0_17], %21 {strides = array<i32>} : memref<128x8xbf16, #tpu.memory_space<vmem>>, vector<128x8xbf16>,
    } else {
    }
    return
  }
  func.func @transform_0(%arg0: i32, %arg1: i32, %arg2: i32) -> (i32, i32) {
    %c0_i32 = arith.constant 0 : i32
    return %arg0, %arg2 : i32, i32
  }
  func.func @transform_1(%arg0: i32, %arg1: i32, %arg2: i32) -> (i32, i32) {
    %c0_i32 = arith.constant 0 : i32
    return %arg2, %arg1 : i32, i32
  }
  func.func @transform_2(%arg0: i32, %arg1: i32, %arg2: i32) -> (i32, i32) {
    %c0_i32 = arith.constant 0 : i32
    %c0_i32_0 = arith.constant 0 : i32
    return %c0_i32, %arg1 : i32, i32
  }
  func.func @transform_3(%arg0: i32, %arg1: i32, %arg2: i32) -> (i32, i32) {
    %c0_i32 = arith.constant 0 : i32
    return %arg0, %arg1 : i32, i32
  }
}

module attributes {stable_mosaic.version = 11 : i64} {
  func.func @_gemm_kernel(%arg0: i32, %arg1: i32, %arg2: i32, %arg3: memref<32x128xbf16, #tpu.memory_space<vmem>>, %arg4: memref<128x16xbf16, #tpu.memory_space<vmem>>, %arg5: memref<1x16xf32, #tpu.memory_space<vmem>>, %arg6: memref<32x16xbf16, #tpu.memory_space<vmem>>, %arg7: memref<32x16xf32, #tpu.memory_space<vmem>>) attributes {dimension_semantics = [#tpu.dimension_semantics<parallel>, #tpu.dimension_semantics<parallel>, #tpu.dimension_semantics<arbitrary>], iteration_bounds = array<i64: 1, 1, 1>, scalar_prefetch = 0 : i64, scratch_operands = 1 : i64, tpu.core_type = #tpu.core_type<tc>, window_params = [{transform_indices = @transform_0, window_bounds = array<i64: 32, 128>}, {transform_indices = @transform_1, window_bounds = array<i64: 128, 16>}, {transform_indices = @transform_2, window_bounds = array<i64: 1, 16>}, {transform_indices = @transform_3, window_bounds = array<i64: 32, 16>}]} {
    %c0_i32 = arith.constant 0 : i32
    %0 = arith.cmpi eq, %arg2, %c0_i32 : i32
    %1 = arith.extui %0 : i1 to i32
    %c0_i32_0 = arith.constant 0 : i32
    %2 = arith.cmpi ne, %1, %c0_i32_0 : i32
    scf.if %2 {
      %cst_10 = arith.constant 0.000000e+00 : f32
      %12 = vector.broadcast %cst_10 : f32 to vector<32x16xf32>
      %c0_11 = arith.constant 0 : index
      %c0_12 = arith.constant 0 : index
      %13 = vector.load %arg7[%c0_11, %c0_12] : memref<32x16xf32, #tpu.memory_space<vmem>>, vector<32x16xf32>
      tpu.vector_store %arg7[%c0_11, %c0_12], %12 {strides = array<i32>} : memref<32x16xf32, #tpu.memory_space<vmem>>, vector<32x16xf32>,
    } else {
    }
    %c0 = arith.constant 0 : index
    %c0_1 = arith.constant 0 : index
    %3 = vector.load %arg7[%c0, %c0_1] : memref<32x16xf32, #tpu.memory_space<vmem>>, vector<32x16xf32>
    %c0_2 = arith.constant 0 : index
    %c0_3 = arith.constant 0 : index
    %4 = vector.load %arg3[%c0_2, %c0_3] : memref<32x128xbf16, #tpu.memory_space<vmem>>, vector<32x128xbf16>
    %c0_4 = arith.constant 0 : index
    %c0_5 = arith.constant 0 : index
    %5 = vector.load %arg4[%c0_4, %c0_5] : memref<128x16xbf16, #tpu.memory_space<vmem>>, vector<128x16xbf16>
    %cst = arith.constant dense<0.000000e+00> : vector<32x16xf32>
    %6 = tpu.matmul %4, %5, %cst {dimension_numbers = #tpu.dot_dimension_numbers<[1], [0], [0], [1], [0, 0, 1, 1], [], []>} : vector<32x128xbf16>, vector<128x16xbf16>, vector<32x16xf32> -> vector<32x16xf32>
    %7 = arith.addf %3, %6 : vector<32x16xf32>
    %c0_6 = arith.constant 0 : index
    %c0_7 = arith.constant 0 : index
    %8 = vector.load %arg7[%c0_6, %c0_7] : memref<32x16xf32, #tpu.memory_space<vmem>>, vector<32x16xf32>
    tpu.vector_store %arg7[%c0_6, %c0_7], %7 {strides = array<i32>} : memref<32x16xf32, #tpu.memory_space<vmem>>, vector<32x16xf32>,
    %c0_i32_8 = arith.constant 0 : i32
    %9 = arith.cmpi eq, %arg2, %c0_i32_8 : i32
    %10 = arith.extui %9 : i1 to i32
    %c0_i32_9 = arith.constant 0 : i32
    %11 = arith.cmpi ne, %10, %c0_i32_9 : i32
    scf.if %11 {
      %c0_10 = arith.constant 0 : index
      %c0_11 = arith.constant 0 : index
      %12 = vector.load %arg7[%c0_10, %c0_11] : memref<32x16xf32, #tpu.memory_space<vmem>>, vector<32x16xf32>
      %c0_12 = arith.constant 0 : index
      %c0_13 = arith.constant 0 : index
      %13 = vector.load %arg5[%c0_12, %c0_13] : memref<1x16xf32, #tpu.memory_space<vmem>>, vector<1x16xf32>
      %14 = vector.broadcast %13 : vector<1x16xf32> to vector<32x16xf32>
      %15 = arith.addf %12, %14 : vector<32x16xf32>
      %cst_14 = arith.constant 0.000000e+00 : f32
      %16 = vector.broadcast %cst_14 : f32 to vector<32x16xf32>
      %17 = arith.cmpf oge, %15, %16 : vector<32x16xf32>
      %cst_15 = arith.constant 0.00999999977 : f32
      %18 = vector.broadcast %cst_15 : f32 to vector<32x16xf32>
      %19 = arith.mulf %18, %15 : vector<32x16xf32>
      %20 = arith.select %17, %15, %19 : vector<32x16xi1>, vector<32x16xf32>
      %21 = arith.truncf %20 : vector<32x16xf32> to vector<32x16xbf16>
      %c0_16 = arith.constant 0 : index
      %c0_17 = arith.constant 0 : index
      %22 = vector.load %arg6[%c0_16, %c0_17] : memref<32x16xbf16, #tpu.memory_space<vmem>>, vector<32x16xbf16>
      tpu.vector_store %arg6[%c0_16, %c0_17], %21 {strides = array<i32>} : memref<32x16xbf16, #tpu.memory_space<vmem>>, vector<32x16xbf16>,
    } else {
    }
    return
  }
  func.func @transform_0(%arg0: i32, %arg1: i32, %arg2: i32) -> (i32, i32) {
    %c0_i32 = arith.constant 0 : i32
    return %arg0, %arg2 : i32, i32
  }
  func.func @transform_1(%arg0: i32, %arg1: i32, %arg2: i32) -> (i32, i32) {
    %c0_i32 = arith.constant 0 : i32
    return %arg2, %arg1 : i32, i32
  }
  func.func @transform_2(%arg0: i32, %arg1: i32, %arg2: i32) -> (i32, i32) {
    %c0_i32 = arith.constant 0 : i32
    %c0_i32_0 = arith.constant 0 : i32
    return %c0_i32, %arg1 : i32, i32
  }
  func.func @transform_3(%arg0: i32, %arg1: i32, %arg2: i32) -> (i32, i32) {
    %c0_i32 = arith.constant 0 : i32
    return %arg0, %arg1 : i32, i32
  }
}

module attributes {stable_mosaic.version = 11 : i64} {
  func.func @_gemm_kernel(%arg0: i32, %arg1: i32, %arg2: i32, %arg3: memref<16x256xbf16, #tpu.memory_space<vmem>>, %arg4: memref<256x32xbf16, #tpu.memory_space<vmem>>, %arg5: memref<1x32xf32, #tpu.memory_space<vmem>>, %arg6: memref<16x32xbf16, #tpu.memory_space<vmem>>, %arg7: memref<16x32xf32, #tpu.memory_space<vmem>>) attributes {dimension_semantics = [#tpu.dimension_semantics<parallel>, #tpu.dimension_semantics<parallel>, #tpu.dimension_semantics<arbitrary>], iteration_bounds = array<i64: 1, 1, 1>, scalar_prefetch = 0 : i64, scratch_operands = 1 : i64, tpu.core_type = #tpu.core_type<tc>, window_params = [{transform_indices = @transform_0, window_bounds = array<i64: 16, 256>}, {transform_indices = @transform_1, window_bounds = array<i64: 256, 32>}, {transform_indices = @transform_2, window_bounds = array<i64: 1, 32>}, {transform_indices = @transform_3, window_bounds = array<i64: 16, 32>}]} {
    %c0_i32 = arith.constant 0 : i32
    %0 = arith.cmpi eq, %arg2, %c0_i32 : i32
    %1 = arith.extui %0 : i1 to i32
    %c0_i32_0 = arith.constant 0 : i32
    %2 = arith.cmpi ne, %1, %c0_i32_0 : i32
    scf.if %2 {
      %cst_10 = arith.constant 0.000000e+00 : f32
      %12 = vector.broadcast %cst_10 : f32 to vector<16x32xf32>
      %c0_11 = arith.constant 0 : index
      %c0_12 = arith.constant 0 : index
      %13 = vector.load %arg7[%c0_11, %c0_12] : memref<16x32xf32, #tpu.memory_space<vmem>>, vector<16x32xf32>
      tpu.vector_store %arg7[%c0_11, %c0_12], %12 {strides = array<i32>} : memref<16x32xf32, #tpu.memory_space<vmem>>, vector<16x32xf32>,
    } else {
    }
    %c0 = arith.constant 0 : index
    %c0_1 = arith.constant 0 : index
    %3 = vector.load %arg7[%c0, %c0_1] : memref<16x32xf32, #tpu.memory_space<vmem>>, vector<16x32xf32>
    %c0_2 = arith.constant 0 : index
    %c0_3 = arith.constant 0 : index
    %4 = vector.load %arg3[%c0_2, %c0_3] : memref<16x256xbf16, #tpu.memory_space<vmem>>, vector<16x256xbf16>
    %c0_4 = arith.constant 0 : index
    %c0_5 = arith.constant 0 : index
    %5 = vector.load %arg4[%c0_4, %c0_5] : memref<256x32xbf16, #tpu.memory_space<vmem>>, vector<256x32xbf16>
    %cst = arith.constant dense<0.000000e+00> : vector<16x32xf32>
    %6 = tpu.matmul %4, %5, %cst {dimension_numbers = #tpu.dot_dimension_numbers<[1], [0], [0], [1], [0, 0, 1, 1], [], []>} : vector<16x256xbf16>, vector<256x32xbf16>, vector<16x32xf32> -> vector<16x32xf32>
    %7 = arith.addf %3, %6 : vector<16x32xf32>
    %c0_6 = arith.constant 0 : index
    %c0_7 = arith.constant 0 : index
    %8 = vector.load %arg7[%c0_6, %c0_7] : memref<16x32xf32, #tpu.memory_space<vmem>>, vector<16x32xf32>
    tpu.vector_store %arg7[%c0_6, %c0_7], %7 {strides = array<i32>} : memref<16x32xf32, #tpu.memory_space<vmem>>, vector<16x32xf32>,
    %c0_i32_8 = arith.constant 0 : i32
    %9 = arith.cmpi eq, %arg2, %c0_i32_8 : i32
    %10 = arith.extui %9 : i1 to i32
    %c0_i32_9 = arith.constant 0 : i32
    %11 = arith.cmpi ne, %10, %c0_i32_9 : i32
    scf.if %11 {
      %c0_10 = arith.constant 0 : index
      %c0_11 = arith.constant 0 : index
      %12 = vector.load %arg7[%c0_10, %c0_11] : memref<16x32xf32, #tpu.memory_space<vmem>>, vector<16x32xf32>
      %c0_12 = arith.constant 0 : index
      %c0_13 = arith.constant 0 : index
      %13 = vector.load %arg5[%c0_12, %c0_13] : memref<1x32xf32, #tpu.memory_space<vmem>>, vector<1x32xf32>
      %14 = vector.broadcast %13 : vector<1x32xf32> to vector<16x32xf32>
      %15 = arith.addf %12, %14 : vector<16x32xf32>
      %cst_14 = arith.constant 0.000000e+00 : f32
      %16 = vector.broadcast %cst_14 : f32 to vector<16x32xf32>
      %17 = arith.cmpf oge, %15, %16 : vector<16x32xf32>
      %cst_15 = arith.constant 0.00999999977 : f32
      %18 = vector.broadcast %cst_15 : f32 to vector<16x32xf32>
      %19 = arith.mulf %18, %15 : vector<16x32xf32>
      %20 = arith.select %17, %15, %19 : vector<16x32xi1>, vector<16x32xf32>
      %21 = arith.truncf %20 : vector<16x32xf32> to vector<16x32xbf16>
      %c0_16 = arith.constant 0 : index
      %c0_17 = arith.constant 0 : index
      %22 = vector.load %arg6[%c0_16, %c0_17] : memref<16x32xbf16, #tpu.memory_space<vmem>>, vector<16x32xbf16>
      tpu.vector_store %arg6[%c0_16, %c0_17], %21 {strides = array<i32>} : memref<16x32xbf16, #tpu.memory_space<vmem>>, vector<16x32xbf16>,
    } else {
    }
    return
  }
  func.func @transform_0(%arg0: i32, %arg1: i32, %arg2: i32) -> (i32, i32) {
    %c0_i32 = arith.constant 0 : i32
    return %arg0, %arg2 : i32, i32
  }
  func.func @transform_1(%arg0: i32, %arg1: i32, %arg2: i32) -> (i32, i32) {
    %c0_i32 = arith.constant 0 : i32
    return %arg2, %arg1 : i32, i32
  }
  func.func @transform_2(%arg0: i32, %arg1: i32, %arg2: i32) -> (i32, i32) {
    %c0_i32 = arith.constant 0 : i32
    %c0_i32_0 = arith.constant 0 : i32
    return %c0_i32, %arg1 : i32, i32
  }
  func.func @transform_3(%arg0: i32, %arg1: i32, %arg2: i32) -> (i32, i32) {
    %c0_i32 = arith.constant 0 : i32
    return %arg0, %arg1 : i32, i32
  }
}

module attributes {stable_mosaic.version = 11 : i64} {
  func.func @_gemm_kernel(%arg0: i32, %arg1: i32, %arg2: i32, %arg3: memref<16x288xbf16, #tpu.memory_space<vmem>>, %arg4: memref<288x1xbf16, #tpu.memory_space<vmem>>, %arg5: memref<1x1xf32, #tpu.memory_space<vmem>>, %arg6: memref<16x1xf32, #tpu.memory_space<vmem>>, %arg7: memref<16x1xf32, #tpu.memory_space<vmem>>) attributes {dimension_semantics = [#tpu.dimension_semantics<parallel>, #tpu.dimension_semantics<parallel>, #tpu.dimension_semantics<arbitrary>], iteration_bounds = array<i64: 1, 1, 1>, scalar_prefetch = 0 : i64, scratch_operands = 1 : i64, tpu.core_type = #tpu.core_type<tc>, window_params = [{transform_indices = @transform_0, window_bounds = array<i64: 16, 288>}, {transform_indices = @transform_1, window_bounds = array<i64: 288, 1>}, {transform_indices = @transform_2, window_bounds = array<i64: 1, 1>}, {transform_indices = @transform_3, window_bounds = array<i64: 16, 1>}]} {
    %c0_i32 = arith.constant 0 : i32
    %0 = arith.cmpi eq, %arg2, %c0_i32 : i32
    %1 = arith.extui %0 : i1 to i32
    %c0_i32_0 = arith.constant 0 : i32
    %2 = arith.cmpi ne, %1, %c0_i32_0 : i32
    scf.if %2 {
      %cst_10 = arith.constant 0.000000e+00 : f32
      %12 = vector.broadcast %cst_10 : f32 to vector<16x1xf32>
      %c0_11 = arith.constant 0 : index
      %c0_12 = arith.constant 0 : index
      %13 = vector.load %arg7[%c0_11, %c0_12] : memref<16x1xf32, #tpu.memory_space<vmem>>, vector<16x1xf32>
      tpu.vector_store %arg7[%c0_11, %c0_12], %12 {strides = array<i32>} : memref<16x1xf32, #tpu.memory_space<vmem>>, vector<16x1xf32>,
    } else {
    }
    %c0 = arith.constant 0 : index
    %c0_1 = arith.constant 0 : index
    %3 = vector.load %arg7[%c0, %c0_1] : memref<16x1xf32, #tpu.memory_space<vmem>>, vector<16x1xf32>
    %c0_2 = arith.constant 0 : index
    %c0_3 = arith.constant 0 : index
    %4 = vector.load %arg3[%c0_2, %c0_3] : memref<16x288xbf16, #tpu.memory_space<vmem>>, vector<16x288xbf16>
    %c0_4 = arith.constant 0 : index
    %c0_5 = arith.constant 0 : index
    %5 = vector.load %arg4[%c0_4, %c0_5] : memref<288x1xbf16, #tpu.memory_space<vmem>>, vector<288x1xbf16>
    %cst = arith.constant dense<0.000000e+00> : vector<16x1xf32>
    %6 = tpu.matmul %4, %5, %cst {dimension_numbers = #tpu.dot_dimension_numbers<[1], [0], [0], [1], [0, 0, 1, 1], [], []>} : vector<16x288xbf16>, vector<288x1xbf16>, vector<16x1xf32> -> vector<16x1xf32>
    %7 = arith.addf %3, %6 : vector<16x1xf32>
    %c0_6 = arith.constant 0 : index
    %c0_7 = arith.constant 0 : index
    %8 = vector.load %arg7[%c0_6, %c0_7] : memref<16x1xf32, #tpu.memory_space<vmem>>, vector<16x1xf32>
    tpu.vector_store %arg7[%c0_6, %c0_7], %7 {strides = array<i32>} : memref<16x1xf32, #tpu.memory_space<vmem>>, vector<16x1xf32>,
    %c0_i32_8 = arith.constant 0 : i32
    %9 = arith.cmpi eq, %arg2, %c0_i32_8 : i32
    %10 = arith.extui %9 : i1 to i32
    %c0_i32_9 = arith.constant 0 : i32
    %11 = arith.cmpi ne, %10, %c0_i32_9 : i32
    scf.if %11 {
      %c0_10 = arith.constant 0 : index
      %c0_11 = arith.constant 0 : index
      %12 = vector.load %arg7[%c0_10, %c0_11] : memref<16x1xf32, #tpu.memory_space<vmem>>, vector<16x1xf32>
      %c0_12 = arith.constant 0 : index
      %c0_13 = arith.constant 0 : index
      %13 = vector.load %arg5[%c0_12, %c0_13] : memref<1x1xf32, #tpu.memory_space<vmem>>, vector<1x1xf32>
      %14 = vector.broadcast %13 : vector<1x1xf32> to vector<16x1xf32>
      %15 = arith.addf %12, %14 : vector<16x1xf32>
      %c0_14 = arith.constant 0 : index
      %c0_15 = arith.constant 0 : index
      %16 = vector.load %arg6[%c0_14, %c0_15] : memref<16x1xf32, #tpu.memory_space<vmem>>, vector<16x1xf32>
      tpu.vector_store %arg6[%c0_14, %c0_15], %15 {strides = array<i32>} : memref<16x1xf32, #tpu.memory_space<vmem>>, vector<16x1xf32>,
    } else {
    }
    return
  }
  func.func @transform_0(%arg0: i32, %arg1: i32, %arg2: i32) -> (i32, i32) {
    %c0_i32 = arith.constant 0 : i32
    return %arg0, %arg2 : i32, i32
  }
  func.func @transform_1(%arg0: i32, %arg1: i32, %arg2: i32) -> (i32, i32) {
    %c0_i32 = arith.constant 0 : i32
    return %arg2, %arg1 : i32, i32
  }
  func.func @transform_2(%arg0: i32, %arg1: i32, %arg2: i32) -> (i32, i32) {
    %c0_i32 = arith.constant 0 : i32
    %c0_i32_0 = arith.constant 0 : i32
    return %c0_i32, %arg1 : i32, i32
  }
  func.func @transform_3(%arg0: i32, %arg1: i32, %arg2: i32) -> (i32, i32) {
    %c0_i32 = arith.constant 0 : i32
    return %arg0, %arg1 : i32, i32
  }
}

module attributes {stable_mosaic.version = 11 : i64} {
  func.func @_gemm_kernel(%arg0: i32, %arg1: i32, %arg2: i32, %arg3: memref<16x128xbf16, #tpu.memory_space<vmem>>, %arg4: memref<128x5xbf16, #tpu.memory_space<vmem>>, %arg5: memref<1x5xf32, #tpu.memory_space<vmem>>, %arg6: memref<16x5xf32, #tpu.memory_space<vmem>>, %arg7: memref<16x5xf32, #tpu.memory_space<vmem>>) attributes {dimension_semantics = [#tpu.dimension_semantics<parallel>, #tpu.dimension_semantics<parallel>, #tpu.dimension_semantics<arbitrary>], iteration_bounds = array<i64: 1, 1, 1>, scalar_prefetch = 0 : i64, scratch_operands = 1 : i64, tpu.core_type = #tpu.core_type<tc>, window_params = [{transform_indices = @transform_0, window_bounds = array<i64: 16, 128>}, {transform_indices = @transform_1, window_bounds = array<i64: 128, 5>}, {transform_indices = @transform_2, window_bounds = array<i64: 1, 5>}, {transform_indices = @transform_3, window_bounds = array<i64: 16, 5>}]} {
    %c0_i32 = arith.constant 0 : i32
    %0 = arith.cmpi eq, %arg2, %c0_i32 : i32
    %1 = arith.extui %0 : i1 to i32
    %c0_i32_0 = arith.constant 0 : i32
    %2 = arith.cmpi ne, %1, %c0_i32_0 : i32
    scf.if %2 {
      %cst_10 = arith.constant 0.000000e+00 : f32
      %12 = vector.broadcast %cst_10 : f32 to vector<16x5xf32>
      %c0_11 = arith.constant 0 : index
      %c0_12 = arith.constant 0 : index
      %13 = vector.load %arg7[%c0_11, %c0_12] : memref<16x5xf32, #tpu.memory_space<vmem>>, vector<16x5xf32>
      tpu.vector_store %arg7[%c0_11, %c0_12], %12 {strides = array<i32>} : memref<16x5xf32, #tpu.memory_space<vmem>>, vector<16x5xf32>,
    } else {
    }
    %c0 = arith.constant 0 : index
    %c0_1 = arith.constant 0 : index
    %3 = vector.load %arg7[%c0, %c0_1] : memref<16x5xf32, #tpu.memory_space<vmem>>, vector<16x5xf32>
    %c0_2 = arith.constant 0 : index
    %c0_3 = arith.constant 0 : index
    %4 = vector.load %arg3[%c0_2, %c0_3] : memref<16x128xbf16, #tpu.memory_space<vmem>>, vector<16x128xbf16>
    %c0_4 = arith.constant 0 : index
    %c0_5 = arith.constant 0 : index
    %5 = vector.load %arg4[%c0_4, %c0_5] : memref<128x5xbf16, #tpu.memory_space<vmem>>, vector<128x5xbf16>
    %cst = arith.constant dense<0.000000e+00> : vector<16x5xf32>
    %6 = tpu.matmul %4, %5, %cst {dimension_numbers = #tpu.dot_dimension_numbers<[1], [0], [0], [1], [0, 0, 1, 1], [], []>} : vector<16x128xbf16>, vector<128x5xbf16>, vector<16x5xf32> -> vector<16x5xf32>
    %7 = arith.addf %3, %6 : vector<16x5xf32>
    %c0_6 = arith.constant 0 : index
    %c0_7 = arith.constant 0 : index
    %8 = vector.load %arg7[%c0_6, %c0_7] : memref<16x5xf32, #tpu.memory_space<vmem>>, vector<16x5xf32>
    tpu.vector_store %arg7[%c0_6, %c0_7], %7 {strides = array<i32>} : memref<16x5xf32, #tpu.memory_space<vmem>>, vector<16x5xf32>,
    %c0_i32_8 = arith.constant 0 : i32
    %9 = arith.cmpi eq, %arg2, %c0_i32_8 : i32
    %10 = arith.extui %9 : i1 to i32
    %c0_i32_9 = arith.constant 0 : i32
    %11 = arith.cmpi ne, %10, %c0_i32_9 : i32
    scf.if %11 {
      %c0_10 = arith.constant 0 : index
      %c0_11 = arith.constant 0 : index
      %12 = vector.load %arg7[%c0_10, %c0_11] : memref<16x5xf32, #tpu.memory_space<vmem>>, vector<16x5xf32>
      %c0_12 = arith.constant 0 : index
      %c0_13 = arith.constant 0 : index
      %13 = vector.load %arg5[%c0_12, %c0_13] : memref<1x5xf32, #tpu.memory_space<vmem>>, vector<1x5xf32>
      %14 = vector.broadcast %13 : vector<1x5xf32> to vector<16x5xf32>
      %15 = arith.addf %12, %14 : vector<16x5xf32>
      %c0_14 = arith.constant 0 : index
      %c0_15 = arith.constant 0 : index
      %16 = vector.load %arg6[%c0_14, %c0_15] : memref<16x5xf32, #tpu.memory_space<vmem>>, vector<16x5xf32>
      tpu.vector_store %arg6[%c0_14, %c0_15], %15 {strides = array<i32>} : memref<16x5xf32, #tpu.memory_space<vmem>>, vector<16x5xf32>,
    } else {
    }
    return
  }
  func.func @transform_0(%arg0: i32, %arg1: i32, %arg2: i32) -> (i32, i32) {
    %c0_i32 = arith.constant 0 : i32
    return %arg0, %arg2 : i32, i32
  }
  func.func @transform_1(%arg0: i32, %arg1: i32, %arg2: i32) -> (i32, i32) {
    %c0_i32 = arith.constant 0 : i32
    return %arg2, %arg1 : i32, i32
  }
  func.func @transform_2(%arg0: i32, %arg1: i32, %arg2: i32) -> (i32, i32) {
    %c0_i32 = arith.constant 0 : i32
    %c0_i32_0 = arith.constant 0 : i32
    return %c0_i32, %arg1 : i32, i32
  }
  func.func @transform_3(%arg0: i32, %arg1: i32, %arg2: i32) -> (i32, i32) {
    %c0_i32 = arith.constant 0 : i32
    return %arg0, %arg1 : i32, i32
  }
}

</mosaic_0001>

<bundles_post_ra>
// kernel: fwd.5
= control target key start
LH: loop header
LB: loop body
LE: loop exit
PB: predicated region body
PF: predicated region fallthrough
CT: control target
= control target key end

     0   :  { %vm19_vm0 = vcmask 64512   ;;  %v565_v1 = vmov 0.0   ;;  %vm132_vm1 = vcmask 392192   ;;  %vm441_vm2 = vcmask 60416   ;;  %s744_s1 = inlined_call_operand.vmem [shape: bf16[48,8], index: 1, kind: input, shape index: {}]   ;;  %s745_s0 = inlined_call_operand.vmem [shape: bf16[128,48], index: 0, kind: input, shape index: {}]   ;;  %s746_s2 = inlined_call_operand.vmem [shape: f32[1,8], index: 2, kind: input, shape index: {}]   ;;  %s747_s3 = inlined_call_operand.vmem [shape: bf16[128,8], index: 3, kind: output, shape index: {}]  }
   0x1   :  { %v554_v0 = vld [vmem:[%s744_s1] sm:$0xff]   ;;  %22 = vst.msk [vmem:[#allocation2 + $0x10] sm:$0xff] %vm19_vm0, %v565_v1  ;;  %20 = vst.msk [vmem:[#allocation2] sm:$0xff] %vm19_vm0, %v565_v1  ;;  %v555_v2 = vld [vmem:[%s744_s1 + $0x8] sm:$0xff]  }
   0x2   :  { %21 = vst.msk [vmem:[#allocation2 + $0x8] sm:$0xff] %vm19_vm0, %v565_v1  ;;  %23 = vst.msk [vmem:[#allocation2 + $0x18] sm:$0xff] %vm19_vm0, %v565_v1  ;;  %525 = vmatprep.subr.bf16.mxu0 %v554_v0  ;;  %547 = vmatprep.subr.bf16.mxu1 %v554_v0  ;;  %v556_v3 = vld [vmem:[%s744_s1 + $0x10] sm:$0xff]   ;;  %v557_v4 = vld [vmem:[%s745_s0] sm:$0xff]  }
   0x3   :  { %24 = vst.msk [vmem:[#allocation2 + $0x20] sm:$0xff] %vm19_vm0, %v565_v1  ;;  %25 = vst.msk [vmem:[#allocation2 + $0x28] sm:$0xff] %vm19_vm0, %v565_v1  ;;  %526 = vmatpush3.bf16.msra.mxu0 %v554_v0  ;;  %550 = vmatpush3.bf16.msra.mxu1 %v554_v0  ;;  %v558_v5 = vld [vmem:[%s745_s0 + $0x20] sm:$0xff]   ;;  %v559_v6 = vld [vmem:[%s745_s0 + $0x8] sm:$0xff]  }
   0x4   :  { %26 = vst.msk [vmem:[#allocation2 + $0x30] sm:$0xff] %vm19_vm0, %v565_v1  ;;  %27 = vst.msk [vmem:[#allocation2 + $0x38] sm:$0xff] %vm19_vm0, %v565_v1  ;;  %527 = vmatprep.subr.bf16.mxu0 %v555_v2  ;;  %548 = vmatprep.subr.bf16.mxu1 %v555_v2  ;;  %v560_v7 = vld [vmem:[%s745_s0 + $0x28] sm:$0xff]   ;;  %v561_v8 = vld [vmem:[%s745_s0 + $0x10] sm:$0xff]  }
   0x5   :  { %28 = vst.msk [vmem:[#allocation2 + $0x40] sm:$0xff] %vm19_vm0, %v565_v1  ;;  %29 = vst.msk [vmem:[#allocation2 + $0x48] sm:$0xff] %vm19_vm0, %v565_v1  ;;  %531 = vmatprep.mubr.msk.bf16.mxu0 %vm132_vm1, %v557_v4  ;;  %539 = vmatprep.mubr.msk.bf16.mxu1 %vm132_vm1, %v558_v5  ;;  %v562_v9 = vld [vmem:[%s745_s0 + $0x30] sm:$0xff]   ;;  %v563_v10 = vld [vmem:[%s745_s0 + $0x18] sm:$0xff]  }
   0x6   :  { %30 = vst.msk [vmem:[#allocation2 + $0x50] sm:$0xff] %vm19_vm0, %v565_v1  ;;  %31 = vst.msk [vmem:[#allocation2 + $0x58] sm:$0xff] %vm19_vm0, %v565_v1  ;;  %v564_v11 = vld [vmem:[%s745_s0 + $0x38] sm:$0xff]   ;;  %v654_v40 = vld [vmem:[%s746_s2] ss:$0 sm:$0xff] }
   0x7   :  { %32 = vst.msk [vmem:[#allocation2 + $0x60] sm:$0xff] %vm19_vm0, %v565_v1  ;;  %33 = vst.msk [vmem:[#allocation2 + $0x68] sm:$0xff] %vm19_vm0, %v565_v1  ;;  %528 = vmatpush3.bf16.msra.mxu0 %v555_v2  ;;  %551 = vmatpush3.bf16.msra.mxu1 %v555_v2 }
   0x8   :  { %34 = vst.msk [vmem:[#allocation2 + $0x70] sm:$0xff] %vm19_vm0, %v565_v1  ;;  %35 = vst.msk [vmem:[#allocation2 + $0x78] sm:$0xff] %vm19_vm0, %v565_v1  ;;  %529 = vmatprep.subr.bf16.mxu0 %v556_v3  ;;  %549 = vmatprep.subr.bf16.mxu1 %v556_v3  ;;  %v38_v12 = vld [vmem:[#allocation2 + $0x10] sm:$0xff]  ;;  %v36_v14 = vld [vmem:[#allocation2] sm:$0xff] }
   0x9   :  { %v39_v18 = vld [vmem:[#allocation2 + $0x18] sm:$0xff]  ;;  %v37_v24 = vld [vmem:[#allocation2 + $0x8] sm:$0xff] }
   0xa   :  { %v40_v38 = vld [vmem:[#allocation2 + $0x20] sm:$0xff]  ;;  %v41_v49 = vld [vmem:[#allocation2 + $0x28] sm:$0xff] }
   0xb   :  { %530 = vmatpush3.bf16.msra.mxu0 %v556_v3  ;;  %552 = vmatpush3.bf16.msra.mxu1 %v556_v3  ;;  %v42_v36 = vld [vmem:[#allocation2 + $0x30] sm:$0xff]  ;;  %v43_v43 = vld [vmem:[#allocation2 + $0x38] sm:$0xff] }
   0xc   :  { %v44_v15 = vld [vmem:[#allocation2 + $0x40] sm:$0xff]  ;;  %v45_v25 = vld [vmem:[#allocation2 + $0x48] sm:$0xff] }
   0xd   :  { %v46_v13 = vld [vmem:[#allocation2 + $0x50] sm:$0xff]  ;;  %v47_v19 = vld [vmem:[#allocation2 + $0x58] sm:$0xff] }
   0xe   :  { %532 = vmatmul.mubr.msk.bf16.vlgmr.msra.gmra.mrb[0].mxu0 %vm132_vm1, %v559_v6  ;;  %540 = vmatmul.mubr.msk.bf16.vlgmr.msra.gmra.mrb[0].mxu1 %vm132_vm1, %v560_v7  ;;  %v48_v39 = vld [vmem:[#allocation2 + $0x60] sm:$0xff]  ;;  %v49_v50 = vld [vmem:[#allocation2 + $0x68] sm:$0xff] }
   0xf   :  { %535 = vmatprep.mubr.msk.bf16.mxu0 %vm132_vm1, %v561_v8  ;;  %543 = vmatprep.mubr.msk.bf16.mxu1 %vm132_vm1, %v562_v9  ;;  %v50_v37 = vld [vmem:[#allocation2 + $0x70] sm:$0xff]  ;;  %v51_v44 = vld [vmem:[#allocation2 + $0x78] sm:$0xff] }
  0x16   :  { %536 = vmatmul.mubr.msk.bf16.gmra.mrb[4].mxu0 %vm132_vm1, %v563_v10  ;;  %544 = vmatmul.mubr.msk.bf16.gmra.mrb[4].mxu1 %vm132_vm1, %v564_v11 }
  0xe1   :  { %v533_v16 = vpop.f32.mrb[0].mxu0  ;;  %v541_v17 = vpop.f32.mrb[0].mxu1 }
  0xe2   :  { %v256_v20 = vadd.f32 %v533_v16, %v38_v12  ;;  %v264_v21 = vadd.f32 %v541_v17, %v46_v13  ;;  %v191_v22 = vpop.f32.mrb[1].mxu0  ;;  %v223_v23 = vpop.f32.mrb[1].mxu1 }
  0xe3   :  { %v254_v26 = vadd.f32 %v191_v22, %v36_v14  ;;  %v262_v27 = vadd.f32 %v223_v23, %v44_v15  ;;  %v534_v28 = vpop.f32.mrb[2].mxu0  ;;  %v542_v29 = vpop.f32.mrb[2].mxu1 }
  0xe4   :  { %273 = vst.msk [vmem:[#allocation2 + $0x10] sm:$0xff] %vm19_vm0, %v256_v20  ;;  %281 = vst.msk [vmem:[#allocation2 + $0x50] sm:$0xff] %vm19_vm0, %v264_v21  ;;  %v257_v30 = vadd.f32 %v534_v28, %v39_v18  ;;  %v265_v31 = vadd.f32 %v542_v29, %v47_v19  ;;  %v194_v32 = vpop.f32.mrb[3].mxu0  ;;  %v226_v33 = vpop.f32.mrb[3].mxu1 }
  0xe5   :  { %271 = vst.msk [vmem:[#allocation2] sm:$0xff] %vm19_vm0, %v254_v26  ;;  %279 = vst.msk [vmem:[#allocation2 + $0x40] sm:$0xff] %vm19_vm0, %v262_v27  ;;  %v255_v34 = vadd.f32 %v194_v32, %v37_v24  ;;  %v263_v35 = vadd.f32 %v226_v33, %v45_v25 }
  0xe6   :  { %274 = vst.msk [vmem:[#allocation2 + $0x18] sm:$0xff] %vm19_vm0, %v257_v30  ;;  %282 = vst.msk [vmem:[#allocation2 + $0x58] sm:$0xff] %vm19_vm0, %v265_v31 }
  0xe7   :  { %272 = vst.msk [vmem:[#allocation2 + $0x8] sm:$0xff] %vm19_vm0, %v255_v34  ;;  %280 = vst.msk [vmem:[#allocation2 + $0x48] sm:$0xff] %vm19_vm0, %v263_v35 }
  0xe9   :  { %v537_v41 = vpop.f32.mrb[4].mxu0  ;;  %v545_v42 = vpop.f32.mrb[4].mxu1 }
  0xea   :  { %v260_v45 = vadd.f32 %v537_v41, %v42_v36  ;;  %v268_v46 = vadd.f32 %v545_v42, %v50_v37  ;;  %v207_v47 = vpop.f32.mrb[5].mxu0  ;;  %v239_v48 = vpop.f32.mrb[5].mxu1 }
  0xeb   :  { %v292_v51 = vld [vmem:[#allocation2 + $0x10] sm:$0xff]  ;;  %v258_v53 = vadd.f32 %v207_v47, %v40_v38  ;;  %v266_v54 = vadd.f32 %v239_v48, %v48_v39  ;;  %v538_v55 = vpop.f32.mrb[6].mxu0  ;;  %v546_v56 = vpop.f32.mrb[6].mxu1 }
  0xec   :  { %v300_v52 = vld [vmem:[#allocation2 + $0x50] sm:$0xff]  ;;  %v315_v57 = vadd.f32 %v654_v40, %v292_v51  ;;  %v290_v59 = vld [vmem:[#allocation2] sm:$0xff]  ;;  %277 = vst.msk [vmem:[#allocation2 + $0x30] sm:$0xff] %vm19_vm0, %v260_v45  ;;  %285 = vst.msk [vmem:[#allocation2 + $0x70] sm:$0xff] %vm19_vm0, %v268_v46  ;;  %v261_v61 = vadd.f32 %v538_v55, %v43_v43  ;;  %v269_v62 = vadd.f32 %v546_v56, %v51_v44  ;;  %v210_v63 = vpop.f32.mrb[7].mxu0  ;;  %v242_v0 = vpop.f32.mrb[7].mxu1 }
  0xed   :  { %v323_v58 = vadd.f32 %v654_v40, %v300_v52  ;;  %v298_v60 = vld [vmem:[#allocation2 + $0x40] sm:$0xff]  ;;  %v313_v1 = vadd.f32 %v654_v40, %v290_v59  ;;  %v293_v3 = vld [vmem:[#allocation2 + $0x18] sm:$0xff]  ;;  %275 = vst.msk [vmem:[#allocation2 + $0x20] sm:$0xff] %vm19_vm0, %v258_v53  ;;  %283 = vst.msk [vmem:[#allocation2 + $0x60] sm:$0xff] %vm19_vm0, %v266_v54  ;;  %v259_v5 = vadd.f32 %v210_v63, %v41_v49 }
  0xee   :  { %v321_v2 = vadd.f32 %v654_v40, %v298_v60  ;;  %v301_v4 = vld [vmem:[#allocation2 + $0x58] sm:$0xff]  ;;  %v267_v6 = vadd.f32 %v242_v0, %v49_v50  ;;  %vm331_vm3 = vcmp.ge.f32.partialorder %v315_v57, 0.0  ;;  %v347_v7 = vmul.f32 0.01, %v315_v57  ;;  %278 = vst.msk [vmem:[#allocation2 + $0x38] sm:$0xff] %vm19_vm0, %v261_v61  ;;  %286 = vst.msk [vmem:[#allocation2 + $0x78] sm:$0xff] %vm19_vm0, %v269_v62 }
  0xef   :  { %vm339_vm4 = vcmp.ge.f32.partialorder %v323_v58, 0.0  ;;  %v355_v8 = vmul.f32 0.01, %v323_v58  ;;  %vm329_vm5 = vcmp.ge.f32.partialorder %v313_v1, 0.0  ;;  %v345_v9 = vmul.f32 0.01, %v313_v1 }
  0xf0   :  { %vm337_vm6 = vcmp.ge.f32.partialorder %v321_v2, 0.0  ;;  %v353_v10 = vmul.f32 0.01, %v321_v2  ;;  %276 = vst.msk [vmem:[#allocation2 + $0x28] sm:$0xff] %vm19_vm0, %v259_v5  ;;  %284 = vst.msk [vmem:[#allocation2 + $0x68] sm:$0xff] %vm19_vm0, %v267_v6  ;;  %v363_v11 = vsel %vm331_vm3, %v315_v57, %v347_v7  ;;  %v316_v13 = vadd.f32 %v654_v40, %v293_v3  ;;  %v291_v15 = vld [vmem:[#allocation2 + $0x8] sm:$0xff] }
  0xf1   :  { %v371_v12 = vsel %vm339_vm4, %v323_v58, %v355_v8  ;;  %v324_v14 = vadd.f32 %v654_v40, %v301_v4  ;;  %v299_v16 = vld [vmem:[#allocation2 + $0x48] sm:$0xff]  ;;  %v500_v17 = vpack.c.bf16 %v363_v11, %v363_v11  ;;  %v361_v19 = vsel %vm329_vm5, %v313_v1, %v345_v9 }
  0xf2   :  { %v508_v18 = vpack.c.bf16 %v371_v12, %v371_v12  ;;  %v369_v20 = vsel %vm337_vm6, %v321_v2, %v353_v10  ;;  %v498_v21 = vpack.c.bf16 %v361_v19, %v361_v19  ;;  %vm332_vm7 = vcmp.ge.f32.partialorder %v316_v13, 0.0 }
  0xf3   :  { %v506_v22 = vpack.c.bf16 %v369_v20, %v369_v20  ;;  %v348_v23 = vmul.f32 0.01, %v316_v13  ;;  %444 = vst.msk [vmem:[%s747_s3 + $0x8] sm:$0xf] %vm441_vm2, %v500_v17  ;;  %vm340_vm8 = vcmp.ge.f32.partialorder %v324_v14, 0.0  ;;  %v314_v25 = vadd.f32 %v654_v40, %v291_v15  ;;  %v296_v27 = vld [vmem:[#allocation2 + $0x30] sm:$0xff] }
  0xf4   :  { %452 = vst.msk [vmem:[%s747_s3 + $0x28] sm:$0xf] %vm441_vm2, %v508_v18  ;;  %v356_v24 = vmul.f32 0.01, %v324_v14  ;;  %v322_v26 = vadd.f32 %v654_v40, %v299_v16  ;;  %v304_v28 = vld [vmem:[#allocation2 + $0x70] sm:$0xff]  ;;  %v319_v30 = vadd.f32 %v654_v40, %v296_v27  ;;  %v294_v35 = vld [vmem:[#allocation2 + $0x20] sm:$0xff] }
  0xf5   :  { %442 = vst.msk [vmem:[%s747_s3] sm:$0xf] %vm441_vm2, %v498_v21  ;;  %450 = vst.msk [vmem:[%s747_s3 + $0x20] sm:$0xf] %vm441_vm2, %v506_v22  ;;  %v364_v29 = vsel %vm332_vm7, %v316_v13, %v348_v23  ;;  %v327_v31 = vadd.f32 %v654_v40, %v304_v28  ;;  %vm330_vm9 = vcmp.ge.f32.partialorder %v314_v25, 0.0  ;;  %v302_v36 = vld [vmem:[#allocation2 + $0x60] sm:$0xff]  ;;  %v317_v46 = vadd.f32 %v654_v40, %v294_v35 }
  0xf6   :  { %v501_v32 = vpack.c.bf16 %v364_v29, %v364_v29  ;;  %v372_v33 = vsel %vm340_vm8, %v324_v14, %v356_v24  ;;  %v346_v34 = vmul.f32 0.01, %v314_v25  ;;  %vm338_vm10 = vcmp.ge.f32.partialorder %v322_v26, 0.0  ;;  %v297_v39 = vld [vmem:[#allocation2 + $0x38] sm:$0xff] }
  0xf7   :  { %v509_v37 = vpack.c.bf16 %v372_v33, %v372_v33  ;;  %v354_v38 = vmul.f32 0.01, %v322_v26  ;;  %vm335_vm11 = vcmp.ge.f32.partialorder %v319_v30, 0.0  ;;  %v351_v42 = vmul.f32 0.01, %v319_v30  ;;  %v305_v52 = vld [vmem:[#allocation2 + $0x78] sm:$0xff] }
  0xf8   :  { %445 = vst.msk [vmem:[%s747_s3 + $0xc] sm:$0xf] %vm441_vm2, %v501_v32  ;;  %v362_v41 = vsel %vm330_vm9, %v314_v25, %v346_v34  ;;  %vm343_vm12 = vcmp.ge.f32.partialorder %v327_v31, 0.0  ;;  %v359_v43 = vmul.f32 0.01, %v327_v31  ;;  %v325_v47 = vadd.f32 %v654_v40, %v302_v36  ;;  %v295_v53 = vld [vmem:[#allocation2 + $0x28] sm:$0xff] }
  0xf9   :  { %453 = vst.msk [vmem:[%s747_s3 + $0x2c] sm:$0xf] %vm441_vm2, %v509_v37  ;;  %v499_v44 = vpack.c.bf16 %v362_v41, %v362_v41  ;;  %v370_v45 = vsel %vm338_vm10, %v322_v26, %v354_v38  ;;  %v367_v49 = vsel %vm335_vm11, %v319_v30, %v351_v42  ;;  %v320_v51 = vadd.f32 %v654_v40, %v297_v39  ;;  %v303_v54 = vld [vmem:[#allocation2 + $0x68] sm:$0xff] }
  0xfa   :  { %v507_v48 = vpack.c.bf16 %v370_v45, %v370_v45  ;;  %v375_v50 = vsel %vm343_vm12, %v327_v31, %v359_v43  ;;  %v504_v55 = vpack.c.bf16 %v367_v49, %v367_v49  ;;  %vm333_vm13 = vcmp.ge.f32.partialorder %v317_v46, 0.0 }
  0xfb   :  { %443 = vst.msk [vmem:[%s747_s3 + $0x4] sm:$0xf] %vm441_vm2, %v499_v44  ;;  %v512_v56 = vpack.c.bf16 %v375_v50, %v375_v50  ;;  %v349_v57 = vmul.f32 0.01, %v317_v46  ;;  %vm341_vm14 = vcmp.ge.f32.partialorder %v325_v47, 0.0  ;;  %vm336_vm15 = vcmp.ge.f32.partialorder %v320_v51, 0.0 }
  0xfc   :  { %451 = vst.msk [vmem:[%s747_s3 + $0x24] sm:$0xf] %vm441_vm2, %v507_v48  ;;  %v357_v58 = vmul.f32 0.01, %v325_v47  ;;  %v352_v59 = vmul.f32 0.01, %v320_v51  ;;  %v328_v61 = vadd.f32 %v654_v40, %v305_v52  ;;  %v318_v62 = vadd.f32 %v654_v40, %v295_v53 }
  0xfd   :  { %448 = vst.msk [vmem:[%s747_s3 + $0x18] sm:$0xf] %vm441_vm2, %v504_v55  ;;  %456 = vst.msk [vmem:[%s747_s3 + $0x38] sm:$0xf] %vm441_vm2, %v512_v56  ;;  %v365_v60 = vsel %vm333_vm13, %v317_v46, %v349_v57  ;;  %v326_v63 = vadd.f32 %v654_v40, %v303_v54 }
  0xfe   :  { %v502_v0 = vpack.c.bf16 %v365_v60, %v365_v60  ;;  %v373_v1 = vsel %vm341_vm14, %v325_v47, %v357_v58  ;;  %v368_v2 = vsel %vm336_vm15, %v320_v51, %v352_v59  ;;  %vm344_vm0 = vcmp.ge.f32.partialorder %v328_v61, 0.0 }
  0xff   :  { %v510_v3 = vpack.c.bf16 %v373_v1, %v373_v1  ;;  %v505_v4 = vpack.c.bf16 %v368_v2, %v368_v2  ;;  %v360_v5 = vmul.f32 0.01, %v328_v61  ;;  %vm334_vm1 = vcmp.ge.f32.partialorder %v318_v62, 0.0 }
 0x100   :  { %446 = vst.msk [vmem:[%s747_s3 + $0x10] sm:$0xf] %vm441_vm2, %v502_v0  ;;  %v350_v6 = vmul.f32 0.01, %v318_v62  ;;  %vm342_vm3 = vcmp.ge.f32.partialorder %v326_v63, 0.0 }
 0x101   :  { %v358_v7 = vmul.f32 0.01, %v326_v63  ;;  %454 = vst.msk [vmem:[%s747_s3 + $0x30] sm:$0xf] %vm441_vm2, %v510_v3  ;;  %449 = vst.msk [vmem:[%s747_s3 + $0x1c] sm:$0xf] %vm441_vm2, %v505_v4  ;;  %v376_v40 = vsel %vm344_vm0, %v328_v61, %v360_v5 }
 0x102   :  { %v513_v8 = vpack.c.bf16 %v376_v40, %v376_v40  ;;  %v366_v9 = vsel %vm334_vm1, %v318_v62, %v350_v6 }
 0x103   :  { %v374_v10 = vsel %vm342_vm3, %v326_v63, %v358_v7  ;;  %v503_v11 = vpack.c.bf16 %v366_v9, %v366_v9 }
 0x104   :  { %v511_v12 = vpack.c.bf16 %v374_v10, %v374_v10  ;;  %457 = vst.msk [vmem:[%s747_s3 + $0x3c] sm:$0xf] %vm441_vm2, %v513_v8 }
 0x105   :  { %447 = vst.msk [vmem:[%s747_s3 + $0x14] sm:$0xf] %vm441_vm2, %v503_v11 }
 0x106   :  { %455 = vst.msk [vmem:[%s747_s3 + $0x34] sm:$0xf] %vm441_vm2, %v511_v12 }

// kernel: fwd.6
= control target key start
LH: loop header
LB: loop body
LE: loop exit
PB: predicated region body
PF: predicated region fallthrough
CT: control target
= control target key end

     0   :  { %vm19_vm0 = vcmask 130048   ;;  %v281_v1 = vmov 0.0   ;;  %vm212_vm3 = vcmask 125952   ;;  %s355_s1 = inlined_call_operand.vmem [shape: bf16[128,16], index: 1, kind: input, shape index: {}]   ;;  %s356_s0 = inlined_call_operand.vmem [shape: bf16[32,128], index: 0, kind: input, shape index: {}]   ;;  %s357_s2 = inlined_call_operand.vmem [shape: f32[1,16], index: 2, kind: input, shape index: {}]   ;;  %s358_s3 = inlined_call_operand.vmem [shape: bf16[32,16], index: 3, kind: output, shape index: {}]  }
   0x1   :  { %v271_v0 = vld [vmem:[%s355_s1] sm:$0xff]   ;;  %22 = vst.msk [vmem:[#allocation2 + $0x10] sm:$0xff] %vm19_vm0, %v281_v1  ;;  %20 = vst.msk [vmem:[#allocation2] sm:$0xff] %vm19_vm0, %v281_v1  ;;  %v272_v2 = vld [vmem:[%s355_s1 + $0x8] sm:$0xff]  }
   0x2   :  { %21 = vst.msk [vmem:[#allocation2 + $0x8] sm:$0xff] %vm19_vm0, %v281_v1  ;;  %23 = vst.msk [vmem:[#allocation2 + $0x18] sm:$0xff] %vm19_vm0, %v281_v1  ;;  %250 = vmatprep.subr.bf16.mxu0 %v271_v0  ;;  %v273_v3 = vld [vmem:[%s355_s1 + $0x10] sm:$0xff]   ;;  %v274_v4 = vld [vmem:[%s355_s1 + $0x18] sm:$0xff]  }
   0x3   :  { %251 = vmatpush3.bf16.msra.mxu0 %v271_v0  ;;  %v279_v5 = vld [vmem:[%s356_s0] sm:$0xff]   ;;  %v276_v7 = vld [vmem:[%s355_s1 + $0x28] sm:$0xff]   ;;  %v277_v8 = vld [vmem:[%s355_s1 + $0x30] sm:$0xff]  }
   0x4   :  { %252 = vmatprep.subr.bf16.mxu0 %v272_v2  ;;  %266 = vmatprep.mubr.bf16.mxu0 %v279_v5  ;;  %v275_v6 = vld [vmem:[%s355_s1 + $0x20] sm:$0xff]   ;;  %v278_v9 = vld [vmem:[%s355_s1 + $0x38] sm:$0xff]   ;;  %v280_v10 = vld [vmem:[%s356_s0 + $0x8] sm:$0xff]  }
   0x5   :  { %v231_v23 = vld [vmem:[%s357_s2] ss:$0 sm:$0xff] }
   0x7   :  { %253 = vmatpush3.bf16.msra.mxu0 %v272_v2 }
   0x8   :  { %254 = vmatprep.subr.bf16.mxu0 %v273_v3  ;;  %v26_v11 = vld [vmem:[#allocation2 + $0x10] sm:$0xff]  ;;  %v24_v12 = vld [vmem:[#allocation2] sm:$0xff] }
   0x9   :  { %v27_v14 = vld [vmem:[#allocation2 + $0x18] sm:$0xff]  ;;  %v25_v17 = vld [vmem:[#allocation2 + $0x8] sm:$0xff] }
   0xb   :  { %255 = vmatpush3.bf16.msra.mxu0 %v273_v3 }
   0xc   :  { %256 = vmatprep.subr.bf16.mxu0 %v274_v4 }
   0xf   :  { %257 = vmatpush3.bf16.msra.mxu0 %v274_v4 }
  0x10   :  { %258 = vmatprep.subr.bf16.mxu0 %v275_v6 }
  0x13   :  { %259 = vmatpush3.bf16.msra.mxu0 %v275_v6 }
  0x14   :  { %260 = vmatprep.subr.bf16.mxu0 %v276_v7 }
  0x17   :  { %261 = vmatpush3.bf16.msra.mxu0 %v276_v7 }
  0x18   :  { %262 = vmatprep.subr.bf16.mxu0 %v277_v8 }
  0x1b   :  { %263 = vmatpush3.bf16.msra.mxu0 %v277_v8 }
  0x1c   :  { %264 = vmatprep.subr.bf16.mxu0 %v278_v9 }
  0x1f   :  { %265 = vmatpush3.bf16.msra.mxu0 %v278_v9 }
  0x22   :  { %267 = vmatmul.mubr.bf16.vlgmr.msra.gmra.mrb[0].mxu0 %v280_v10 }
  0xf5   :  { %v268_v13 = vpop.f32.mrb[0].mxu0 }
  0xf6   :  { %v159_v15 = vadd.f32 %v268_v13, %v26_v11  ;;  %v142_v16 = vpop.f32.mrb[1].mxu0 }
  0xf7   :  { %v157_v18 = vadd.f32 %v142_v16, %v24_v12  ;;  %v269_v19 = vpop.f32.mrb[2].mxu0 }
  0xf8   :  { %164 = vst.msk [vmem:[#allocation2 + $0x10] sm:$0xff] %vm19_vm0, %v159_v15  ;;  %v160_v20 = vadd.f32 %v269_v19, %v27_v14  ;;  %v145_v21 = vpop.f32.mrb[3].mxu0 }
  0xf9   :  { %162 = vst.msk [vmem:[#allocation2] sm:$0xff] %vm19_vm0, %v157_v18  ;;  %v158_v22 = vadd.f32 %v145_v21, %v25_v17 }
  0xfa   :  { %165 = vst.msk [vmem:[#allocation2 + $0x18] sm:$0xff] %vm19_vm0, %v160_v20 }
  0xfb   :  { %163 = vst.msk [vmem:[#allocation2 + $0x8] sm:$0xff] %vm19_vm0, %v158_v22 }
  0xff   :  { %v171_v24 = vld [vmem:[#allocation2 + $0x10] sm:$0xff] }
 0x100   :  { %v182_v25 = vadd.f32 %v231_v23, %v171_v24  ;;  %v169_v26 = vld [vmem:[#allocation2] sm:$0xff] }
 0x101   :  { %v180_v27 = vadd.f32 %v231_v23, %v169_v26  ;;  %v172_v28 = vld [vmem:[#allocation2 + $0x18] sm:$0xff] }
 0x102   :  { %vm186_vm1 = vcmp.ge.f32.partialorder %v182_v25, 0.0  ;;  %v190_v29 = vmul.f32 0.01, %v182_v25  ;;  %v183_v30 = vadd.f32 %v231_v23, %v172_v28  ;;  %v170_v31 = vld [vmem:[#allocation2 + $0x8] sm:$0xff] }
 0x103   :  { %vm184_vm2 = vcmp.ge.f32.partialorder %v180_v27, 0.0  ;;  %v188_v32 = vmul.f32 0.01, %v180_v27  ;;  %v181_v33 = vadd.f32 %v231_v23, %v170_v31 }
 0x104   :  { %v194_v34 = vsel %vm186_vm1, %v182_v25, %v190_v29  ;;  %vm187_vm4 = vcmp.ge.f32.partialorder %v183_v30, 0.0  ;;  %v191_v35 = vmul.f32 0.01, %v183_v30 }
 0x105   :  { %v238_v36 = vpack.c.bf16 %v194_v34, %v194_v34  ;;  %v192_v37 = vsel %vm184_vm2, %v180_v27, %v188_v32  ;;  %vm185_vm5 = vcmp.ge.f32.partialorder %v181_v33, 0.0  ;;  %v189_v38 = vmul.f32 0.01, %v181_v33 }
 0x106   :  { %v236_v39 = vpack.c.bf16 %v192_v37, %v192_v37  ;;  %v195_v40 = vsel %vm187_vm4, %v183_v30, %v191_v35 }
 0x107   :  { %215 = vst.msk [vmem:[%s358_s3 + $0x8] sm:$0xf] %vm212_vm3, %v238_v36  ;;  %v239_v41 = vpack.c.bf16 %v195_v40, %v195_v40  ;;  %v193_v42 = vsel %vm185_vm5, %v181_v33, %v189_v38 }
 0x108   :  { %213 = vst.msk [vmem:[%s358_s3] sm:$0xf] %vm212_vm3, %v236_v39  ;;  %v237_v43 = vpack.c.bf16 %v193_v42, %v193_v42 }
 0x109   :  { %216 = vst.msk [vmem:[%s358_s3 + $0xc] sm:$0xf] %vm212_vm3, %v239_v41 }
 0x10a   :  { %214 = vst.msk [vmem:[%s358_s3 + $0x4] sm:$0xf] %vm212_vm3, %v237_v43 }

// kernel: fwd.7
= control target key start
LH: loop header
LB: loop body
LE: loop exit
PB: predicated region body
PF: predicated region fallthrough
CT: control target
= control target key end

     0   :  { %vm19_vm0 = vcmask 261120   ;;  %v310_v18 = vmov 0.0   ;;  %vm238_vm2 = vcmask 257024   ;;  %s398_s1 = inlined_call_operand.vmem [shape: bf16[256,32], index: 1, kind: input, shape index: {}]   ;;  %s399_s0 = inlined_call_operand.vmem [shape: bf16[16,256], index: 0, kind: input, shape index: {}]   ;;  %s400_s2 = inlined_call_operand.vmem [shape: f32[1,32], index: 2, kind: input, shape index: {}]   ;;  %s401_s3 = inlined_call_operand.vmem [shape: bf16[16,32], index: 3, kind: output, shape index: {}]  }
   0x1   :  { %v291_v0 = vld [vmem:[%s398_s1 + $0x40] sm:$0xff]   ;;  %v293_v2 = vld [vmem:[%s398_s1 + $0x48] sm:$0xff]   ;;  %v295_v4 = vld [vmem:[%s398_s1 + $0x50] sm:$0xff]   ;;  %20 = vst.msk [vmem:[#allocation2] sm:$0xff] %vm19_vm0, %v310_v18 }
   0x2   :  { %v292_v1 = vld [vmem:[%s398_s1] sm:$0xff]   ;;  %268 = vmatprep.subr.bf16.mxu0 %v291_v0  ;;  %v294_v3 = vld [vmem:[%s398_s1 + $0x8] sm:$0xff]   ;;  %v296_v5 = vld [vmem:[%s398_s1 + $0x10] sm:$0xff]   ;;  %21 = vst.msk [vmem:[#allocation2 + $0x8] sm:$0xff] %vm19_vm0, %v310_v18 }
   0x3   :  { %269 = vmatpush3.bf16.msra.mxu0 %v292_v1  ;;  %v297_v6 = vld [vmem:[%s398_s1 + $0x58] sm:$0xff]   ;;  %v299_v8 = vld [vmem:[%s398_s1 + $0x60] sm:$0xff]   ;;  %v301_v10 = vld [vmem:[%s398_s1 + $0x68] sm:$0xff]  }
   0x4   :  { %270 = vmatprep.subr.bf16.mxu0 %v293_v2  ;;  %v298_v7 = vld [vmem:[%s398_s1 + $0x18] sm:$0xff]   ;;  %v300_v9 = vld [vmem:[%s398_s1 + $0x20] sm:$0xff]   ;;  %v302_v12 = vld [vmem:[%s398_s1 + $0x28] sm:$0xff]  }
   0x5   :  { %v309_v11 = vld [vmem:[%s399_s0 + $0x4] ss:$8 sps:$4 sm:$0xff]   ;;  %v303_v13 = vld [vmem:[%s398_s1 + $0x70] sm:$0xff]   ;;  %v305_v15 = vld [vmem:[%s398_s1 + $0x78] sm:$0xff]  }
   0x6   :  { %196 = vmatprep.mubr.bf16.mxu0 %v309_v11  ;;  %v304_v14 = vld [vmem:[%s398_s1 + $0x30] sm:$0xff]   ;;  %v306_v16 = vld [vmem:[%s398_s1 + $0x38] sm:$0xff]   ;;  %v307_v17 = vld [vmem:[%s399_s0] ss:$8 sps:$4 sm:$0xff]  }
   0x7   :  { %271 = vmatpush3.bf16.msra.mxu0 %v294_v3  ;;  %v263_v29 = vld [vmem:[%s400_s2] ss:$0 sm:$0xff] }
   0x8   :  { %272 = vmatprep.subr.bf16.mxu0 %v295_v4  ;;  %v22_v20 = vld [vmem:[#allocation2] sm:$0xff] }
   0x9   :  { %v23_v24 = vld [vmem:[#allocation2 + $0x8] sm:$0xff] }
   0xb   :  { %273 = vmatpush3.bf16.msra.mxu0 %v296_v5 }
   0xc   :  { %274 = vmatprep.subr.bf16.mxu0 %v297_v6 }
   0xf   :  { %275 = vmatpush3.bf16.msra.mxu0 %v298_v7 }
  0x10   :  { %276 = vmatprep.subr.bf16.mxu0 %v299_v8 }
  0x13   :  { %277 = vmatpush3.bf16.msra.mxu0 %v300_v9 }
  0x14   :  { %278 = vmatprep.subr.bf16.mxu0 %v301_v10 }
  0x17   :  { %279 = vmatpush3.bf16.msra.mxu0 %v302_v12 }
  0x18   :  { %280 = vmatprep.subr.bf16.mxu0 %v303_v13 }
  0x1b   :  { %281 = vmatpush3.bf16.msra.mxu0 %v304_v14 }
  0x1c   :  { %282 = vmatprep.subr.bf16.mxu0 %v305_v15 }
  0x1f   :  { %283 = vmatpush3.bf16.msra.mxu0 %v306_v16 }
  0x22   :  { %197 = vmatmul.mubr.bf16.vlgmr.msra.gmra.mrb[0].mxu0 %v307_v17 }
  0xf5   :  { %v284_v19 = vpop.f32.mrb[0].mxu0 }
  0xf6   :  { %v285_v21 = vpop.f32.mrb[1].mxu0 }
  0xf7   :  { %v286_v22 = vadd.f32 %v285_v21, %v284_v19  ;;  %v287_v23 = vpop.f32.mrb[2].mxu0 }
  0xf8   :  { %v288_v25 = vpop.f32.mrb[3].mxu0 }
  0xf9   :  { %v205_v26 = vadd.f32 %v286_v22, %v22_v20  ;;  %v289_v27 = vadd.f32 %v288_v25, %v287_v23 }
  0xfb   :  { %208 = vst.msk [vmem:[#allocation2] sm:$0xff] %vm19_vm0, %v205_v26  ;;  %v206_v28 = vadd.f32 %v289_v27, %v23_v24 }
  0xfd   :  { %209 = vst.msk [vmem:[#allocation2 + $0x8] sm:$0xff] %vm19_vm0, %v206_v28 }
 0x102   :  { %v213_v30 = vld [vmem:[#allocation2] sm:$0xff] }
 0x103   :  { %v222_v31 = vadd.f32 %v263_v29, %v213_v30 }
 0x104   :  { %v214_v32 = vld [vmem:[#allocation2 + $0x8] sm:$0xff] }
 0x105   :  { %vm224_vm1 = vcmp.ge.f32.partialorder %v222_v31, 0.0  ;;  %v226_v33 = vmul.f32 0.01, %v222_v31  ;;  %v223_v34 = vadd.f32 %v263_v29, %v214_v32 }
 0x107   :  { %v228_v35 = vsel %vm224_vm1, %v222_v31, %v226_v33  ;;  %vm225_vm3 = vcmp.ge.f32.partialorder %v223_v34, 0.0  ;;  %v227_v36 = vmul.f32 0.01, %v223_v34 }
 0x108   :  { %v266_v37 = vpack.c.bf16 %v228_v35, %v228_v35 }
 0x109   :  { %v229_v38 = vsel %vm225_vm3, %v223_v34, %v227_v36 }
 0x10a   :  { %239 = vst.msk [vmem:[%s401_s3] sm:$0xf] %vm238_vm2, %v266_v37  ;;  %v267_v39 = vpack.c.bf16 %v229_v38, %v229_v38 }
 0x10c   :  { %240 = vst.msk [vmem:[%s401_s3 + $0x4] sm:$0xf] %vm238_vm2, %v267_v39 }

// kernel: fwd.9
= control target key start
LH: loop header
LB: loop body
LE: loop exit
PB: predicated region body
PF: predicated region fallthrough
CT: control target
= control target key end

     0   :  { %vm19_vm0 = vcmask 39936   ;;  %v212_v0 = vmov 0.0   ;;  %vm213_vm1 = vmmov 0   ;;  %s276_s1 = inlined_call_operand.vmem [shape: bf16[128,5], index: 1, kind: input, shape index: {}]   ;;  %s277_s0 = inlined_call_operand.vmem [shape: bf16[16,128], index: 0, kind: input, shape index: {}]   ;;  %s278_s2 = inlined_call_operand.vmem [shape: f32[1,5], index: 2, kind: input, shape index: {}]   ;;  %s279_s3 = inlined_call_operand.vmem [shape: f32[16,5], index: 3, kind: output, shape index: {}]  }
   0x1   :  { %181 = vmatprep.subr.bf16.mxu0 %v212_v0  ;;  %v203_v1 = vld [vmem:[%s276_s1] sm:$0xff]   ;;  %197 = vmatprep.mubr.msk.bf16.mxu0 %vm213_vm1, %v212_v0  ;;  %20 = vst.msk [vmem:[#allocation2] sm:$0xff] %vm19_vm0, %v212_v0  ;;  %21 = vst.msk [vmem:[#allocation2 + $0x8] sm:$0xff] %vm19_vm0, %v212_v0  ;;  %v204_v2 = vld [vmem:[%s276_s1 + $0x8] sm:$0xff]  }
   0x2   :  { %182 = vmatpush3.bf16.msra.mxu0 %v203_v1  ;;  %v205_v3 = vld [vmem:[%s276_s1 + $0x10] sm:$0xff]   ;;  %v206_v4 = vld [vmem:[%s276_s1 + $0x18] sm:$0xff]   ;;  %v207_v5 = vld [vmem:[%s276_s1 + $0x20] sm:$0xff]  }
   0x3   :  { %183 = vmatprep.subr.bf16.mxu0 %v212_v0  ;;  %v208_v6 = vld [vmem:[%s276_s1 + $0x28] sm:$0xff]   ;;  %v209_v7 = vld [vmem:[%s276_s1 + $0x30] sm:$0xff]   ;;  %v210_v8 = vld [vmem:[%s276_s1 + $0x38] sm:$0xff]  }
   0x4   :  { %v211_v9 = vld [vmem:[%s277_s0] sm:$0xff]  }
   0x5   :  { %v171_v18 = vld [vmem:[%s278_s2] ss:$0 sm:$0xff] }
   0x6   :  { %184 = vmatpush3.bf16.msra.mxu0 %v204_v2 }
   0x7   :  { %185 = vmatprep.subr.bf16.mxu0 %v212_v0 }
   0x8   :  { %v22_v10 = vld [vmem:[#allocation2] sm:$0xff]  ;;  %v23_v12 = vld [vmem:[#allocation2 + $0x8] sm:$0xff] }
   0xa   :  { %186 = vmatpush3.bf16.msra.mxu0 %v205_v3 }
   0xb   :  { %187 = vmatprep.subr.bf16.mxu0 %v212_v0 }
   0xe   :  { %188 = vmatpush3.bf16.msra.mxu0 %v206_v4 }
   0xf   :  { %189 = vmatprep.subr.bf16.mxu0 %v212_v0 }
  0x12   :  { %190 = vmatpush3.bf16.msra.mxu0 %v207_v5 }
  0x13   :  { %191 = vmatprep.subr.bf16.mxu0 %v212_v0 }
  0x16   :  { %192 = vmatpush3.bf16.msra.mxu0 %v208_v6 }
  0x17   :  { %193 = vmatprep.subr.bf16.mxu0 %v212_v0 }
  0x1a   :  { %194 = vmatpush3.bf16.msra.mxu0 %v209_v7 }
  0x1b   :  { %195 = vmatprep.subr.bf16.mxu0 %v212_v0 }
  0x1e   :  { %196 = vmatpush3.bf16.msra.mxu0 %v210_v8 }
  0x21   :  { %198 = vmatmul.mubr.bf16.vlgmr.msra.gmra.mrb[0].mxu0 %v211_v9 }
  0xf4   :  { %v130_v11 = vpop.f32.mrb[0].mxu0 }
  0xf5   :  { %v137_v13 = vadd.f32 %v130_v11, %v22_v10  ;;  %v199_v14 = vpop.f32.mrb[1].mxu0 }
  0xf6   :  { %v133_v15 = vpop.f32.mrb[2].mxu0 }
  0xf7   :  { %140 = vst.msk [vmem:[#allocation2] sm:$0xff] %vm19_vm0, %v137_v13  ;;  %v138_v16 = vadd.f32 %v133_v15, %v23_v12  ;;  %v200_v17 = vpop.f32.mrb[3].mxu0 }
  0xf9   :  { %141 = vst.msk [vmem:[#allocation2 + $0x8] sm:$0xff] %vm19_vm0, %v138_v16 }
  0xfe   :  { %v145_v19 = vld [vmem:[#allocation2] sm:$0xff] }
  0xff   :  { %v154_v20 = vadd.f32 %v171_v18, %v145_v19 }
 0x100   :  { %v146_v21 = vld [vmem:[#allocation2 + $0x8] sm:$0xff] }
 0x101   :  { %156 = vst.msk [vmem:[%s279_s3] sm:$0xff] %vm19_vm0, %v154_v20  ;;  %v155_v22 = vadd.f32 %v171_v18, %v146_v21 }
 0x103   :  { %157 = vst.msk [vmem:[%s279_s3 + $0x8] sm:$0xff] %vm19_vm0, %v155_v22 }

// kernel: fwd.8
= control target key start
LH: loop header
LB: loop body
LE: loop exit
PB: predicated region body
PF: predicated region fallthrough
CT: control target
= control target key end

     0   :  { %vm21_vm0 = vcmask 7168   ;;  %v380_v1 = vmov 0.0   ;;  %vm381_vm1 = vmmov 0   ;;  %vm189_vm2 = vcmask 261120   ;;  %s480_s1 = inlined_call_operand.vmem [shape: bf16[288,1], index: 1, kind: input, shape index: {}]   ;;  %s481_s0 = inlined_call_operand.vmem [shape: bf16[16,288], index: 0, kind: input, shape index: {}]   ;;  %s482_s2 = inlined_call_operand.<no memory space> [shape: f32[1,1], index: 2, kind: input, shape index: {}]   ;;  %s483_s3 = inlined_call_operand.vmem [shape: f32[16,1], index: 3, kind: output, shape index: {}]  }
   0x1   :  { %v358_v0 = vld [vmem:[%s480_s1 + $0x40] sm:$0xff]   ;;  %22 = vst.msk [vmem:[#allocation2] sm:$0xff] %vm21_vm0, %v380_v1  ;;  %23 = vst.msk [vmem:[#allocation2 + $0x8] sm:$0xff] %vm21_vm0, %v380_v1  ;;  %348 = vmatprep.subr.bf16.mxu1 %v380_v1  ;;  %352 = vmatprep.mubr.msk.bf16.mxu1 %vm381_vm1, %v380_v1  ;;  %v360_v3 = vld [vmem:[%s480_s1 + $0x48] sm:$0xff]   ;;  %v8_v22 = vstv %s482_s2 }
   0x2   :  { %v359_v2 = vld [vmem:[%s480_s1] sm:$0xff]   ;;  %323 = vmatprep.subr.bf16.mxu0 %v358_v0  ;;  %v361_v4 = vld [vmem:[%s480_s1 + $0x8] sm:$0xff]   ;;  %v362_v5 = vld [vmem:[%s480_s1 + $0x50] sm:$0xff]   ;;  %9 = vst [vmem:[#allocation3] sm:$0x1] %v8_v22 }
   0x3   :  { %324 = vmatpush3.bf16.msra.mxu0 %v359_v2  ;;  %v363_v6 = vld [vmem:[%s480_s1 + $0x10] sm:$0xff]   ;;  %v364_v7 = vld [vmem:[%s480_s1 + $0x58] sm:$0xff]   ;;  %v366_v9 = vld [vmem:[%s480_s1 + $0x60] sm:$0xff]  }
   0x4   :  { %325 = vmatprep.subr.bf16.mxu0 %v360_v3  ;;  %v365_v8 = vld [vmem:[%s480_s1 + $0x18] sm:$0xff]   ;;  %v372_v10 = vld [vmem:[%s480_s1 + $0x80] sm:$0xff]   ;;  %v368_v12 = vld [vmem:[%s480_s1 + $0x68] sm:$0xff]  }
   0x5   :  { %v367_v11 = vld [vmem:[%s480_s1 + $0x20] sm:$0xff]   ;;  %349 = vmatpush3.bf16.msra.mxu1 %v372_v10  ;;  %v375_v13 = vld [vmem:[%s480_s1 + $0x88] sm:$0xff]   ;;  %v370_v16 = vld [vmem:[%s480_s1 + $0x70] sm:$0xff]  }
   0x6   :  { %350 = vmatprep.subr.bf16.mxu1 %v380_v1  ;;  %v369_v14 = vld [vmem:[%s480_s1 + $0x28] sm:$0xff]   ;;  %v378_v15 = vld [vmem:[%s481_s0 + $0x4] ss:$12 sps:$4 sm:$0xff]   ;;  %v373_v19 = vld [vmem:[%s480_s1 + $0x78] sm:$0xff]  }
   0x7   :  { %326 = vmatpush3.bf16.msra.mxu0 %v361_v4  ;;  %v379_v17 = vld [vmem:[%s481_s0 + $0x8] ss:$12 sps:$4 sm:$0xff]   ;;  %225 = vmatprep.mubr.bf16.mxu0 %v378_v15  ;;  %v374_v20 = vld [vmem:[%s480_s1 + $0x38] sm:$0xff]   ;;  %v376_v21 = vld [vmem:[%s481_s0] ss:$12 sps:$4 sm:$0xff]  }
   0x8   :  { %327 = vmatprep.subr.bf16.mxu0 %v362_v5  ;;  %v371_v18 = vld [vmem:[%s480_s1 + $0x30] sm:$0xff]   ;;  %v24_v31 = vld [vmem:[#allocation2] sm:$0xff]  ;;  %v25_v35 = vld [vmem:[#allocation2 + $0x8] sm:$0xff] }
   0x9   :  { %351 = vmatpush3.bf16.msra.mxu1 %v375_v13  ;;  %v322_v39 = vld [vmem:[#allocation3] ss:$0 sm:$0xff] }
   0xb   :  { %328 = vmatpush3.bf16.msra.mxu0 %v363_v6 }
   0xc   :  { %329 = vmatprep.subr.bf16.mxu0 %v364_v7  ;;  %353 = vmatmul.mubr.msk.bf16.vlgmr.msra.gmra.mrb[0].mxu1 %vm189_vm2, %v379_v17 }
   0xf   :  { %330 = vmatpush3.bf16.msra.mxu0 %v365_v8 }
  0x10   :  { %331 = vmatprep.subr.bf16.mxu0 %v366_v9 }
  0x13   :  { %332 = vmatpush3.bf16.msra.mxu0 %v367_v11 }
  0x14   :  { %333 = vmatprep.subr.bf16.mxu0 %v368_v12 }
  0x17   :  { %334 = vmatpush3.bf16.msra.mxu0 %v369_v14 }
  0x18   :  { %335 = vmatprep.subr.bf16.mxu0 %v370_v16 }
  0x1b   :  { %336 = vmatpush3.bf16.msra.mxu0 %v371_v18 }
  0x1c   :  { %337 = vmatprep.subr.bf16.mxu0 %v373_v19 }
  0x1f   :  { %338 = vmatpush3.bf16.msra.mxu0 %v374_v20 }
  0x22   :  { %226 = vmatmul.mubr.bf16.vlgmr.msra.gmra.mrb[0].mxu0 %v376_v21 }
  0xdf   :  { %v268_v23 = vpop.f32.mrb[0].mxu1 }
  0xe0   :  { %v354_v24 = vpop.f32.mrb[1].mxu1 }
  0xe1   :  { %v271_v25 = vpop.f32.mrb[2].mxu1 }
  0xe2   :  { %v355_v26 = vpop.f32.mrb[3].mxu1 }
  0xf5   :  { %v339_v27 = vpop.f32.mrb[0].mxu0 }
  0xf6   :  { %v340_v28 = vpop.f32.mrb[1].mxu0 }
  0xf7   :  { %v341_v29 = vadd.f32 %v340_v28, %v339_v27  ;;  %v342_v30 = vpop.f32.mrb[2].mxu0 }
  0xf8   :  { %v343_v32 = vpop.f32.mrb[3].mxu0 }
  0xf9   :  { %v269_v33 = vadd.f32 %v341_v29, %v268_v23  ;;  %v344_v34 = vadd.f32 %v343_v32, %v342_v30 }
  0xfb   :  { %v275_v36 = vadd.f32 %v269_v33, %v24_v31  ;;  %v272_v37 = vadd.f32 %v344_v34, %v271_v25 }
  0xfd   :  { %278 = vst.msk [vmem:[#allocation2] sm:$0xff] %vm21_vm0, %v275_v36  ;;  %v276_v38 = vadd.f32 %v272_v37, %v25_v35 }
  0xff   :  { %279 = vst.msk [vmem:[#allocation2 + $0x8] sm:$0xff] %vm21_vm0, %v276_v38 }
 0x104   :  { %v283_v40 = vld [vmem:[#allocation2] sm:$0xff] }
 0x105   :  { %v292_v41 = vadd.f32 %v322_v39, %v283_v40 }
 0x106   :  { %v284_v42 = vld [vmem:[#allocation2 + $0x8] sm:$0xff] }
 0x107   :  { %294 = vst.msk [vmem:[%s483_s3] sm:$0xff] %vm21_vm0, %v292_v41  ;;  %v293_v43 = vadd.f32 %v322_v39, %v284_v42 }
 0x109   :  { %295 = vst.msk [vmem:[%s483_s3 + $0x8] sm:$0xff] %vm21_vm0, %v293_v43 }

</bundles_post_ra>
